<compile_context>
chip_gen: v7x
topology: tpu7x:2x2x1
jax: 0.10.0
libtpu: 0.0.40
codegen_flags: <defaults>
</compile_context>

<pallas_src>
import functools
from typing import NamedTuple

import jax
import jax.numpy as jnp
from jax import lax
from jax.experimental import pallas as pl
from jax.experimental.pallas import tpu as pltpu

_LANE = 128
_MIB = 1 << 20


def _round_up(n: int, m: int) -> int:
    return ((n + m - 1) // m) * m


def _largest_divisor(n: int, cap: int, multiple_of: int = 1):
    for d in range(min(cap, n), 0, -1):
        if n % d == 0 and d % multiple_of == 0:
            return d
    return None


def _pick_row_tile(m: int, cap: int = 256) -> int:
    d = _largest_divisor(m, cap, multiple_of=8)
    return d if d is not None else m          # fall back to one full block


def _activation(z, activation: str):
    if activation == "tanh":
        return jnp.tanh(z)                    # EUP
    return jnp.maximum(z, 0.0)                # VPU


# ---------------------------------------------------------------------------
# Kernels
# ---------------------------------------------------------------------------
def _xproj_kernel(x_ref, w_ref, b_ref, o_ref):
    """Hoisted input projection: Zx = X @ Wx^T + (bx + bh). Fully parallel."""
    o_ref[...] = (jnp.dot(x_ref[...], w_ref[...],
                          preferred_element_type=jnp.float32) + b_ref[...])


def _rnn_recurrence_kernel(zx_ref, h0_ref, wh_ref, o_ref, h_scratch, *,
                           activation: str, block_t: int):
    """Serial recurrence, Tb timesteps per grid step.
    zx_ref: (Tb, B, Hp) f32 precomputed x-projection (+bias); wh_ref resident;
    hidden state carried across grid steps in VMEM scratch."""
    @pl.when(pl.program_id(0) == 0)
    def _():
        h_scratch[...] = h0_ref[...]

    wh = wh_ref[...]                                  # hoisted weight read

    def step(t, h):
        z = zx_ref[t] + jnp.dot(h.astype(wh.dtype), wh,
                                preferred_element_type=jnp.float32)
        h_new = _activation(z, activation)
        o_ref[t] = h_new.astype(o_ref.dtype)
        return h_new

    h_scratch[...] = lax.fori_loop(0, block_t, step, h_scratch[...],
                                   unroll=True)


def _rnn_step_kernel(x_ref, h_ref, wx_ref, wh_ref, b_ref, o_ref, *,
                     activation: str):
    """Single cell step: x and h_pre as two VMEM operands (no wrapper concat)."""
    z = jnp.dot(x_ref[...], wx_ref[...], preferred_element_type=jnp.float32)
    z = z + jnp.dot(h_ref[...], wh_ref[...], preferred_element_type=jnp.float32)
    o_ref[...] = _activation(z + b_ref[...], activation).astype(o_ref.dtype)


def _rnn_step_kernel_no_h(x_ref, wx_ref, b_ref, o_ref, *, activation: str):
    """h_pre=None path: skip the Wh matmul and the zeros operand entirely."""
    z = jnp.dot(x_ref[...], wx_ref[...], preferred_element_type=jnp.float32)
    o_ref[...] = _activation(z + b_ref[...], activation).astype(o_ref.dtype)


# ---------------------------------------------------------------------------
# Parameter preparation (done ONCE, outside the per-step call)
# ---------------------------------------------------------------------------
class RNNCellParams(NamedTuple):
    wx_t: jax.Array        # (in_f, Hp)  Wx^T, compute dtype
    wh_step_t: jax.Array   # (H,  Hp)    Wh^T (step path, unpadded rows)
    wh_seq_t: jax.Array    # (Hp, Hp)    Wh^T (padded rows, sequence path)
    bias: jax.Array        # (1, Hp)     bx + bh, f32
    input_size: int
    hidden_size: int
    hidden_pad: int
    activation: str


def prepare_rnn_cell_params(wx, bx, wh, bh, activation: str = "tanh",
                            compute_dtype=jnp.bfloat16) -> RNNCellParams:
    """wx: (H, in_f) / wh: (H, H) in PyTorch Linear (out, in) layout; bx, bh: (H,)."""
    if activation not in ("tanh", "relu"):
        raise ValueError("Invalid activation function")
    H, in_f = wx.shape
    # NOTE: on v6e/v7x (256-wide MXU) padding Hp toward 256 when H is just
    # above 128 costs no extra MXU tiles; 128 alignment is ideal on v5e.
    Hp = _round_up(H, _LANE)
    pc = Hp - H
    wx_t = jnp.pad(wx.T, ((0, 0), (0, pc))).astype(compute_dtype)       # (in_f, Hp)
    wh_step_t = jnp.pad(wh.T, ((0, 0), (0, pc))).astype(compute_dtype)  # (H,  Hp)
    wh_seq_t = jnp.pad(wh.T, ((0, pc), (0, pc))).astype(compute_dtype)  # (Hp, Hp)
    bias = jnp.pad((bx + bh).astype(jnp.float32).reshape(1, H),
                   ((0, 0), (0, pc)))                                    # (1, Hp)
    return RNNCellParams(wx_t, wh_step_t, wh_seq_t, bias, in_f, H, Hp, activation)


# ---------------------------------------------------------------------------
# Wrappers
# ---------------------------------------------------------------------------
def rnn_cell_forward(params: RNNCellParams, x, h_pre=None, return_padded=False):
    """Single RNNCell step.  x: (B, in_f); h_pre: (B, H) / (B, Hp) / None.
    Returns (B, H), or the padded (B, Hp) state if return_padded=True."""
    B = x.shape[0]
    H, Hp = params.hidden_size, params.hidden_pad
    cdt = params.wx_t.dtype
    act = params.activation
    x = x.astype(cdt)                                 # cast once, in the wrapper
    full = lambda shape: pl.BlockSpec(shape, lambda: (0,) * len(shape))

    if h_pre is None:
        kernel = functools.partial(_rnn_step_kernel_no_h, activation=act)
        operands = (x, params.wx_t, params.bias)
        K = params.input_size
    else:
        wh = params.wh_seq_t if h_pre.shape[1] == Hp else params.wh_step_t
        h_pre = h_pre.astype(cdt)
        kernel = functools.partial(_rnn_step_kernel, activation=act)
        operands = (x, h_pre, params.wx_t, wh, params.bias)
        K = params.input_size + h_pre.shape[1]

    flops = 2 * B * K * Hp
    trans = B * Hp if act == "tanh" else 0
    bytes_acc = sum(int(a.size) * a.dtype.itemsize for a in operands) + B * Hp * 4

    out = pl.pallas_call(
        kernel,
        out_shape=jax.ShapeDtypeStruct((B, Hp), jnp.float32),
        grid=(),
        in_specs=[full(a.shape) for a in operands],
        out_specs=full((B, Hp)),
        cost_estimate=pl.CostEstimate(flops=flops, transcendentals=trans,
                                      bytes_accessed=int(bytes_acc)),
    )(*operands)
    return out if return_padded else out[:, :H]


def _input_projection(params: RNNCellParams, xs):
    """Zx = xs @ Wx^T + (bx+bh) as ONE big parallel Pallas matmul (no seq dep)."""
    T, B, in_f = xs.shape
    Hp = params.hidden_pad
    M = T * B
    xm = xs.reshape(M, in_f).astype(params.wx_t.dtype)
    tm = _pick_row_tile(M)
    flops = 2 * M * in_f * Hp
    bytes_acc = (int(xm.size) * xm.dtype.itemsize
                 + int(params.wx_t.size) * params.wx_t.dtype.itemsize
                 + int(params.bias.size) * 4 + M * Hp * 4)
    zx = pl.pallas_call(
        _xproj_kernel,
        out_shape=jax.ShapeDtypeStruct((M, Hp), jnp.float32),
        grid=(M // tm,),
        in_specs=[
            pl.BlockSpec((tm, in_f), lambda i: (i, 0)),   # row tile
            pl.BlockSpec((in_f, Hp), lambda i: (0, 0)),   # Wx^T resident
            pl.BlockSpec((1, Hp), lambda i: (0, 0)),      # bias resident
        ],
        out_specs=pl.BlockSpec((tm, Hp), lambda i: (i, 0)),
        compiler_params=pltpu.CompilerParams(
            dimension_semantics=("parallel",)),
        cost_estimate=pl.CostEstimate(flops=flops, transcendentals=0,
                                      bytes_accessed=int(bytes_acc)),
    )(xm, params.wx_t, params.bias)
    return zx.reshape(T, B, Hp)


def rnn_sequence_forward(params: RNNCellParams, xs, h0=None, block_t=16):
    """Apply the cell over a sequence.  xs: (T, B, in_f); h0: (B, H) or None.
    Returns (T, B, H).  Input projection hoisted; recurrence blocked over time."""
    T, B, in_f = xs.shape
    H, Hp = params.hidden_size, params.hidden_pad
    act = params.activation

    # 1) Hoisted, fully parallel input projection (includes the summed bias).
    zx = _input_projection(params, xs)                    # (T, B, Hp) f32

    # 2) Serial recurrence, Tb timesteps per grid step (amortize grid overhead).
    Tb = _largest_divisor(T, min(block_t, T)) or 1
    nblk = T // Tb

    if h0 is None:
        h0p = jnp.zeros((B, Hp), jnp.float32)
    else:
        h0p = jnp.pad(h0.astype(jnp.float32), ((0, 0), (0, Hp - H)))

    wh = params.wh_seq_t
    kernel = functools.partial(_rnn_recurrence_kernel, activation=act, block_t=Tb)

    # VMEM footprint: double-buffered zx/out blocks + resident h0/Wh + scratch.
    blk_bytes = Tb * B * Hp * 4
    vmem_need = (2 * blk_bytes + 2 * blk_bytes + 2 * B * Hp * 4
                 + 2 * int(wh.size) * wh.dtype.itemsize + B * Hp * 4)
    vmem_limit = int(min(64 * _MIB, max(2 * vmem_need + 2 * _MIB, 16 * _MIB)))
    # TODO(synk): for very large H, single-buffer the loop-invariant operands
    # (pipeline_mode=pl.Buffered(1) on Wh/h0) so Hp x Hp still fits v7x's
    # 64 MiB VMEM, and split the batch over a leading "parallel" grid axis to
    # use both v7x TensorCores.

    flops = 2 * T * B * Hp * Hp
    trans = T * B * Hp if act == "tanh" else 0
    bytes_acc = (int(zx.size) * 4 + int(h0p.size) * 4
                 + int(wh.size) * wh.dtype.itemsize + T * B * Hp * 4)

    out = pl.pallas_call(
        kernel,
        out_shape=jax.ShapeDtypeStruct((T, B, Hp), jnp.float32),
        grid=(nblk,),
        in_specs=[
            pl.BlockSpec((Tb, B, Hp), lambda i: (i, 0, 0)),   # zx block (streams)
            pl.BlockSpec((B, Hp), lambda i: (0, 0)),          # h0 (resident)
            pl.BlockSpec((Hp, Hp), lambda i: (0, 0)),         # Wh^T (resident)
        ],
        out_specs=pl.BlockSpec((Tb, B, Hp), lambda i: (i, 0, 0)),
        scratch_shapes=[pltpu.VMEM((B, Hp), jnp.float32)],    # carried hidden state
        compiler_params=pltpu.CompilerParams(
            dimension_semantics=("arbitrary",),               # time blocks serial
            vmem_limit_bytes=vmem_limit),
        cost_estimate=pl.CostEstimate(flops=flops, transcendentals=trans,
                                      bytes_accessed=int(bytes_acc)),
    )(zx, h0p, wh)
    return out[:, :, :H]


# ---------------------------------------------------------------------------
# Demo / correctness check
# ---------------------------------------------------------------------------
def xavier_uniform(key, shape, dtype=jnp.float32):
    """torch.nn.init.xavier_uniform_ for a 2D (fan_out, fan_in) tensor."""
    fan_out, fan_in = shape
    limit = (6.0 / (fan_in + fan_out)) ** 0.5
    return jax.random.uniform(key, shape, dtype, minval=-limit, maxval=limit)


if __name__ == "__main__":
    input_size, hidden_size, batch, T = 16, 32, 2, 8
    activation = "tanh"

    root = jax.random.PRNGKey(0)
    k_x, k_h, k_wx, k_bx, k_wh, k_bh, k_xs = jax.random.split(root, 7)

    wx = xavier_uniform(k_wx, (hidden_size, input_size))      # x2h.weight
    bx = xavier_uniform(k_bx, (1, hidden_size)).reshape(-1)   # x2h.bias
    wh = xavier_uniform(k_wh, (hidden_size, hidden_size))     # h2h.weight
    bh = xavier_uniform(k_bh, (1, hidden_size)).reshape(-1)   # h2h.bias

    x = jax.random.normal(k_x, (batch, input_size), jnp.float32)
    h_pre = jax.random.normal(k_h, (batch, hidden_size), jnp.float32)
    xs = jax.random.normal(k_xs, (T, batch, input_size), jnp.float32)

    def ref_cell(xi, hi):
        z = xi @ wx.T + bx + bh
        if hi is not None:
            z = z + hi @ wh.T
        return jnp.tanh(z) if activation == "tanh" else jnp.maximum(z, 0.0)

    def scan_step(h, x_t):
        h2 = ref_cell(x_t, h)
        return h2, h2

    _, ref_seq = jax.lax.scan(scan_step, h_pre, xs)

    # ---- f32 compute path (tight tolerance) ----
    p32 = prepare_rnn_cell_params(wx, bx, wh, bh, activation,
                                  compute_dtype=jnp.float32)

    hs = jax.block_until_ready(rnn_cell_forward(p32, x, h_pre))
    assert hs.shape == (batch, hidden_size)
    assert jnp.allclose(hs, ref_cell(x, h_pre), atol=1e-5, rtol=1e-5)

    hs0 = jax.block_until_ready(rnn_cell_forward(p32, x, None))
    assert jnp.allclose(hs0, ref_cell(x, None), atol=1e-5, rtol=1e-5)

    seq32 = jax.block_until_ready(rnn_sequence_forward(p32, xs, h_pre))
    assert seq32.shape == (T, batch, hidden_size)
    assert jnp.allclose(seq32, ref_seq, atol=5e-4, rtol=5e-4)

    # ---- bf16 compute path (MXU-native weights/activations, f32 accumulation) ----
    pbf = prepare_rnn_cell_params(wx, bx, wh, bh, activation,
                                  compute_dtype=jnp.bfloat16)

    hs_bf = jax.block_until_ready(rnn_cell_forward(pbf, x, h_pre))
    assert jnp.allclose(hs_bf, ref_cell(x, h_pre), atol=5e-2, rtol=5e-2)

    # Padded-state round trip (no pad/slice between chained calls).
    hp_pad = jax.block_until_ready(rnn_cell_forward(pbf, x, h_pre,
                                                    return_padded=True))
    assert hp_pad.shape == (batch, pbf.hidden_pad)
    hs_bf2 = rnn_cell_forward(pbf, x, hp_pad)
    assert jnp.allclose(hs_bf2, ref_cell(x, hs_bf), atol=5e-2, rtol=5e-2)

    seq_bf = jax.block_until_ready(rnn_sequence_forward(pbf, xs, h_pre))
    assert jnp.allclose(seq_bf, ref_seq, atol=1e-1, rtol=1e-1)

    print("KERNEL_OK")
</pallas_src>

<mosaic_0001>
module attributes {stable_mosaic.version = 11 : i64} {
  func.func @_rnn_step_kernel(%arg0: memref<2x16xf32, #tpu.memory_space<vmem>>, %arg1: memref<2x32xf32, #tpu.memory_space<vmem>>, %arg2: memref<16x128xf32, #tpu.memory_space<vmem>>, %arg3: memref<32x128xf32, #tpu.memory_space<vmem>>, %arg4: memref<1x128xf32, #tpu.memory_space<vmem>>, %arg5: memref<2x128xf32, #tpu.memory_space<vmem>>) attributes {dimension_semantics = [], scalar_prefetch = 0 : i64, scratch_operands = 0 : i64, tpu.core_type = #tpu.core_type<tc>} {
    %c0 = arith.constant 0 : index
    %c0_0 = arith.constant 0 : index
    %0 = vector.load %arg0[%c0, %c0_0] : memref<2x16xf32, #tpu.memory_space<vmem>>, vector<2x16xf32>
    %c0_1 = arith.constant 0 : index
    %c0_2 = arith.constant 0 : index
    %1 = vector.load %arg2[%c0_1, %c0_2] : memref<16x128xf32, #tpu.memory_space<vmem>>, vector<16x128xf32>
    %cst = arith.constant dense<0.000000e+00> : vector<2x128xf32>
    %2 = tpu.matmul %0, %1, %cst {dimension_numbers = #tpu.dot_dimension_numbers<[1], [0], [0], [1], [0, 0, 1, 1], [], []>} : vector<2x16xf32>, vector<16x128xf32>, vector<2x128xf32> -> vector<2x128xf32>
    %c0_3 = arith.constant 0 : index
    %c0_4 = arith.constant 0 : index
    %3 = vector.load %arg1[%c0_3, %c0_4] : memref<2x32xf32, #tpu.memory_space<vmem>>, vector<2x32xf32>
    %c0_5 = arith.constant 0 : index
    %c0_6 = arith.constant 0 : index
    %4 = vector.load %arg3[%c0_5, %c0_6] : memref<32x128xf32, #tpu.memory_space<vmem>>, vector<32x128xf32>
    %cst_7 = arith.constant dense<0.000000e+00> : vector<2x128xf32>
    %5 = tpu.matmul %3, %4, %cst_7 {dimension_numbers = #tpu.dot_dimension_numbers<[1], [0], [0], [1], [0, 0, 1, 1], [], []>} : vector<2x32xf32>, vector<32x128xf32>, vector<2x128xf32> -> vector<2x128xf32>
    %6 = arith.addf %2, %5 : vector<2x128xf32>
    %c0_8 = arith.constant 0 : index
    %c0_9 = arith.constant 0 : index
    %7 = vector.load %arg4[%c0_8, %c0_9] : memref<1x128xf32, #tpu.memory_space<vmem>>, vector<1x128xf32>
    %8 = vector.broadcast %7 : vector<1x128xf32> to vector<2x128xf32>
    %9 = arith.addf %6, %8 : vector<2x128xf32>
    %10 = math.tanh %9 : vector<2x128xf32>
    %c0_10 = arith.constant 0 : index
    %c0_11 = arith.constant 0 : index
    %11 = vector.load %arg5[%c0_10, %c0_11] : memref<2x128xf32, #tpu.memory_space<vmem>>, vector<2x128xf32>
    tpu.vector_store %arg5[%c0_10, %c0_11], %10 {strides = array<i32>} : memref<2x128xf32, #tpu.memory_space<vmem>>, vector<2x128xf32>,
    return
  }
}

</mosaic_0001>

<bundles_post_ra>
// kernel: tpu_custom_call.1
= control target key start
LH: loop header
LB: loop body
LE: loop exit
PB: predicated region body
PF: predicated region fallthrough
CT: control target
= control target key end

     0   :  { %10 = vsyncpa [#allocation3], 0  ;;  %s484_s0 = inlined_call_operand.hbm [shape: f32[2,16], index: 0, kind: input, shape index: {}]   ;;  %s485_s1 = inlined_call_operand.vmem [shape: f32[2,32], index: 1, kind: input, shape index: {}]   ;;  %s486_s2 = inlined_call_operand.hbm [shape: f32[16,128], index: 2, kind: input, shape index: {}]   ;;  %s487_s3 = inlined_call_operand.hbm [shape: f32[32,128], index: 3, kind: input, shape index: {}]   ;;  %s488_s4 = inlined_call_operand.vmem [shape: f32[1,128], index: 4, kind: input, shape index: {}]   ;;  %s489_s5 = inlined_call_operand.hbm [shape: f32[2,128], index: 5, kind: output, shape index: {}]  }
   0x1   :  { %11 = vsyncpa [#allocation6], 0 }
   0x2   :  { %12 = vsyncpa [#allocation4], 0  ;;  %s385_s18 = smov [#allocation5]   ;;  %s291_s22 = scalar_lea.hbm %s486_s2, 256 }
   0x3   :  { %s30_s19 = sshll.u32 %s385_s18, 4  ;;  %p292_p0 = scmp.ne.s32.totalorder %s486_s2, %s291_s22  ;;  %s31_s19 = int_to_ptr.vmem [resolvable:$true] %s30_s19 }
   0x4   :  { %p295_p1 = scmp.lt.u32.totalorder %s291_s22, %s486_s2 }
   0x6   :  { %p297_p2 = pnand %p295_p1, %p292_p0 }
   0x8   :  { %300 = shalt.err (!%p297_p2)
}
   0x9   :  { %s301_s27 = scalar_lea.vmem %s31_s19, 256  ;;  %p306_p4 = scmp.lt.s32.totalorder %s31_s19, %s31_s19 }
   0xa   :  { %p302_p3 = scmp.ne.s32.totalorder %s31_s19, %s301_s27  ;;  %p307_p5 = scmp.lt.s32.totalorder %s301_s27, %s301_s27 }
   0xc   :  { %p308_p6 = por %p307_p5, %p306_p4 }
   0xe   :  { %p309_p7 = pnand %p308_p6, %p302_p3 }
  0x10   :  { %312 = shalt.err (!%p309_p7)
}
  0x11   :  { %s386_s28 = smov 128   ;;  %s387_s29 = smov 8  }
  0x12   :  { %36 = dma.hbm_to_vmem [thread:$0]  %s486_s2, 256, %s31_s19, [#allocation6], %s386_s28, %s386_s28, %s387_s29  }
  0x13   :  { %s388_s7 = smov [#allocation2]   ;;  %s389_s9 = smov [#allocation7]  }
  0x14   :  { %s19_s8 = sshll.u32 %s388_s7, 4  ;;  %s42_s10 = sshll.u32 %s389_s9, 4  ;;  %s20_s8 = int_to_ptr.vmem [resolvable:$true] %s19_s8  ;;  %s43_s10 = int_to_ptr.vmem [resolvable:$true] %s42_s10 }
  0x15   :  { %s313_s13 = scalar_lea.hbm %s484_s0, 32 }
  0x16   :  { %p314_p8 = scmp.ne.s32.totalorder %s484_s0, %s313_s13  ;;  %p317_p9 = scmp.lt.u32.totalorder %s313_s13, %s484_s0 }
  0x18   :  { %p319_p10 = pnand %p317_p9, %p314_p8 }
  0x1a   :  { %322 = shalt.err (!%p319_p10)
}
  0x1b   :  { %s323_s2 = scalar_lea.vmem %s20_s8, 32  ;;  %p328_p12 = scmp.lt.s32.totalorder %s20_s8, %s20_s8 }
  0x1c   :  { %p324_p11 = scmp.ne.s32.totalorder %s20_s8, %s323_s2  ;;  %p329_p13 = scmp.lt.s32.totalorder %s323_s2, %s323_s2 }
  0x1e   :  { %p330_p0 = por %p329_p13, %p328_p12 }
  0x20   :  { %p331_p1 = pnand %p330_p0, %p324_p11 }
  0x22   :  { %334 = shalt.err (!%p331_p1)
}
  0x23   :  { %22 = dma.hbm_to_vmem [thread:$0]  %s484_s0, 32, %s20_s8, [#allocation3]  }
  0x24   :  { %s335_s22 = scalar_lea.hbm %s487_s3, 512 }
  0x25   :  { %p336_p2 = scmp.ne.s32.totalorder %s487_s3, %s335_s22  ;;  %p339_p3 = scmp.lt.u32.totalorder %s335_s22, %s487_s3 }
  0x27   :  { %p341_p4 = pnand %p339_p3, %p336_p2 }
  0x29   :  { %344 = shalt.err (!%p341_p4)
}
  0x2a   :  { %s345_s27 = scalar_lea.vmem %s43_s10, 512  ;;  %p350_p6 = scmp.lt.s32.totalorder %s43_s10, %s43_s10 }
  0x2b   :  { %p346_p5 = scmp.ne.s32.totalorder %s43_s10, %s345_s27  ;;  %p351_p7 = scmp.lt.s32.totalorder %s345_s27, %s345_s27 }
  0x2d   :  { %p352_p8 = por %p351_p7, %p350_p6 }
  0x2f   :  { %p353_p9 = pnand %p352_p8, %p346_p5 }
  0x31   :  { %356 = shalt.err (!%p353_p9)
}
  0x32   :  { %48 = dma.hbm_to_vmem [thread:$0]  %s487_s3, 512, %s43_s10, [#allocation6], %s386_s28, %s386_s28, %s387_s29  }
  0x33   :  { %379 = dma.done.wait [#allocation3], 32  }
  0x34   :  { %380 = vsyncadd [#allocation3], 4294967264 }
  0x35   :  { %381 = dma.done.wait [#allocation6], 768  }
  0x36   :  { %382 = vsyncadd [#allocation6], 4294966528  ;;  %v390_v0 = vmov 0.0|0.0   ;;  %vm391_vm0 = vmmov 0   ;;  %v392_v1 = vmov 0.0   ;;  %v64_v2 = vld [vmem:[#allocation7] sm:$0xff] }
  0x37   :  { %271 = vmatprep.subr.bf16.mxu0 %v390_v0  ;;  %277 = vmatprep.subr.bf16.mxu1 %v390_v0  ;;  %v65_v3 = vld [vmem:[#allocation7 + $0x8] sm:$0xff]  ;;  %v61_v4 = vld [vmem:[#allocation5] sm:$0xff]  ;;  %v62_v6 = vld [vmem:[#allocation5 + $0x8] sm:$0xff]  ;;  %vm142_vm1 = vcmask 130048   ;;  %vm68_vm2 = vcmask 261120   ;;  %s393_s7 = smov [#allocation8]  }
  0x38   :  { %268 = vmatprep.mubr.msk.f32.mxu1 %vm391_vm0, %v392_v1  ;;  %261 = vmatprep.mubr.msk.f32.mxu0 %vm391_vm0, %v392_v1  ;;  %v272_v5 = vpack.c.bf16 %v65_v3, %v64_v2  ;;  %v66_v7 = vld [vmem:[#allocation7 + $0x10] sm:$0xff]  ;;  %v67_v8 = vld [vmem:[#allocation7 + $0x18] sm:$0xff]  ;;  %v278_v9 = vpack.c.bf16 %v62_v6, %v61_v4  ;;  %v60_v11 = vld [vmem:[#allocation2] sm:$0x3]  ;;  %s232_s8 = sshll.u32 %s393_s7, 4  ;;  %s233_s8 = int_to_ptr.vmem [resolvable:$true] %s232_s8 }
  0x39   :  { %v275_v10 = vpack.c.bf16 %v67_v8, %v66_v7  ;;  %v63_v12 = vld [vmem:[%s485_s1] sm:$0x3]  ;;  %s357_s9 = scalar_lea.vmem %s233_s8, 32  ;;  %p362_p11 = scmp.lt.s32.totalorder %s233_s8, %s233_s8 }
  0x3a   :  { %273 = vmatpush3.bf16.msra.mxu0 %v272_v5  ;;  %279 = vmatpush3.bf16.msra.mxu1 %v278_v9  ;;  %v244_v16 = vld [vmem:[%s488_s4] ss:$0 sm:$0xff]  ;;  %p358_p10 = scmp.ne.s32.totalorder %s233_s8, %s357_s9  ;;  %p363_p12 = scmp.lt.s32.totalorder %s357_s9, %s357_s9 }
  0x3b   :  { %274 = vmatprep.subr.bf16.mxu0 %v390_v0 }
  0x3c   :  { %p364_p13 = por %p363_p12, %p362_p11 }
  0x3d   :  { %269 = vmatmul.mubr.msk.f32.vlgmr.msra.gmra.mrb[0].mxu1 %vm142_vm1, %v60_v11 }
  0x3e   :  { %276 = vmatpush3.bf16.msra.mxu0 %v275_v10  ;;  %p365_p0 = pnand %p364_p13, %p358_p10 }
  0x41   :  { %262 = vmatmul.mubr.msk.f32.vlgmr.msra.gmra.mrb[0].mxu0 %vm68_vm2, %v63_v12 }
 0x110   :  { %v212_v13 = vpop.f32.mrb[0].mxu1 }
 0x111   :  { %v270_v14 = vpop.f32.mrb[1].mxu1 }
 0x114   :  { %v138_v15 = vpop.f32.mrb[0].mxu0 }
 0x115   :  { %v213_v17 = vadd.f32 %v212_v13, %v138_v15  ;;  %v263_v18 = vpop.f32.mrb[1].mxu0 }
 0x117   :  { %v223_v19 = vadd.f32 %v244_v16, %v213_v17 }
 0x119   :  { %289 = vtanh.f32 %v223_v19 }
 0x123   :  { %v290_v20 = vpop.eup %289 }
 0x124   :  { %225 = vst [vmem:[#allocation8] sm:$0x3] %v290_v20 }
 0x125   :  { %368 = shalt.err (!%p365_p0)
}
 0x126   :  { %s369_s4 = scalar_lea.hbm %s489_s5, 32 }
 0x127   :  { %p370_p1 = scmp.ne.s32.totalorder %s489_s5, %s369_s4  ;;  %p373_p2 = scmp.lt.u32.totalorder %s369_s4, %s489_s5 }
 0x129   :  { %p375_p3 = pnand %p373_p2, %p370_p1 }
 0x12b   :  { %378 = shalt.err (!%p375_p3)
}
 0x12c   :  { %235 = dma.vmem_to_hbm [thread:$0]  %s233_s8, 32, %s489_s5, [#allocation4]  }
 0x12d   :  { %383 = dma.done.wait [#allocation4], 32  }
 0x12e   :  { %384 = vsyncadd [#allocation4], 4294967264 }
 0x12f   :  { %239 = vsyncpa [#allocation3], 1 }
 0x130   :  { %240 = vsyncpa [#allocation6], 1 }
 0x131   :  { %241 = vsyncpa [#allocation4], 1 }

</bundles_post_ra>
